<compile_context>
chip_gen: v7x
topology: tpu7x:2x2x1
jax: 0.10.0
libtpu: 0.0.40
codegen_flags: <defaults>
</compile_context>

<pallas_src>
import jax
import jax.numpy as jnp
from jax import lax
from jax.experimental import pallas as pl
from jax.experimental.pallas import tpu as pltpu


# --------------------------------------------------------------------------
# In-kernel stencil helpers
# --------------------------------------------------------------------------

def _laplace_relu_4d(p):
    """p: (B, 1, H, W) f32. Zero-padded 3x3 laplacian + ReLU.  Each shifted
    operand (zero row/col concatenated with a slice) is built right before it
    is subtracted so only ~2 plane-sized temporaries are live at a time."""
    B, _, H, W = p.shape
    lap = 4.0 * p
    if H > 1:
        zrow = jnp.zeros((B, 1, 1, W), p.dtype)
        lap = lap - jnp.concatenate([zrow, p[:, :, :H - 1, :]], axis=2)  # up
        lap = lap - jnp.concatenate([p[:, :, 1:, :], zrow], axis=2)      # down
    if W > 1:
        zcol = jnp.zeros((B, 1, H, 1), p.dtype)
        lap = lap - jnp.concatenate([zcol, p[:, :, :, :W - 1]], axis=3)  # left
        lap = lap - jnp.concatenate([p[:, :, :, 1:], zcol], axis=3)      # right
    return jnp.maximum(lap, 0.0)


def _laplace_relu_flat(p, H, W, keep_left, keep_right):
    """p: (B, 1, H*W) f32 (lane-dense row-major flattening of (H, W)).
    Vertical taps are lane shifts by W; horizontal taps are lane shifts by 1
    masked at row boundaries."""
    B = p.shape[0]
    HW = H * W
    lap = 4.0 * p
    if H > 1:
        zrow = jnp.zeros((B, 1, W), p.dtype)
        lap = lap - jnp.concatenate([zrow, p[:, :, :HW - W]], axis=2)    # up
        lap = lap - jnp.concatenate([p[:, :, W:], zrow], axis=2)         # down
    if W > 1:
        z1 = jnp.zeros((B, 1, 1), p.dtype)
        left = jnp.concatenate([z1, p[:, :, :HW - 1]], axis=2)
        lap = lap - jnp.where(keep_left, left, 0.0)                      # left
        right = jnp.concatenate([p[:, :, 1:], z1], axis=2)
        lap = lap - jnp.where(keep_right, right, 0.0)                    # right
    return jnp.maximum(lap, 0.0)


# --------------------------------------------------------------------------
# Kernel bodies
# --------------------------------------------------------------------------

def _make_kernel_4d(inv_c):
    def kernel(snow_ref, clean_ref, snow_out, clean_out, mask_out):
        # Channel mean = f32-accumulating sum * (1/C); no f32 copy of the
        # input block is materialized for sub-32-bit inputs.
        snow_p = jnp.sum(snow_ref[...], axis=1, keepdims=True,
                         dtype=jnp.float32) * inv_c
        clean_p = jnp.sum(clean_ref[...], axis=1, keepdims=True,
                          dtype=jnp.float32) * inv_c
        snow_lap = _laplace_relu_4d(snow_p)
        clean_lap = _laplace_relu_4d(clean_p)
        mask_lap = jnp.maximum(snow_lap - clean_lap, 0.0)
        snow_out[...] = snow_lap.astype(snow_out.dtype)
        clean_out[...] = clean_lap.astype(clean_out.dtype)
        mask_out[...] = mask_lap.astype(mask_out.dtype)
    return kernel


def _make_kernel_flat(inv_c, H, W):
    def kernel(snow_ref, clean_ref, snow_out, clean_out, mask_out):
        snow_p = jnp.sum(snow_ref[...], axis=1, keepdims=True,
                         dtype=jnp.float32) * inv_c
        clean_p = jnp.sum(clean_ref[...], axis=1, keepdims=True,
                          dtype=jnp.float32) * inv_c
        if W > 1:
            # Column index within each image row.  This path only runs for
            # power-of-two W, so a bitwise AND replaces the modulo.
            lane = lax.broadcasted_iota(jnp.int32, snow_p.shape, 2)
            col = lane & (W - 1)
            keep_left = col != 0
            keep_right = col != (W - 1)
        else:
            keep_left = keep_right = None
        snow_lap = _laplace_relu_flat(snow_p, H, W, keep_left, keep_right)
        clean_lap = _laplace_relu_flat(clean_p, H, W, keep_left, keep_right)
        mask_lap = jnp.maximum(snow_lap - clean_lap, 0.0)
        snow_out[...] = snow_lap.astype(snow_out.dtype)
        clean_out[...] = clean_lap.astype(clean_out.dtype)
        mask_out[...] = mask_lap.astype(mask_out.dtype)
    return kernel


# --------------------------------------------------------------------------
# Generation-aware sizing helpers
# --------------------------------------------------------------------------

def _vmem_capacity_bytes():
    """Per-TensorCore VMEM capacity; conservative 64 MiB (v7x) fallback."""
    try:
        cap = getattr(pltpu.get_tpu_info(), "vmem_capacity_bytes", None)
        if cap:
            return int(cap)
    except Exception:
        pass
    return 64 << 20


def _padded_bytes(shape, dtype):
    """VMEM footprint of one buffer: last dim padded to 128 lanes, 2nd-to-last
    dim to the sublane multiple (8 for 32-bit, 16 for 16-bit, 32 for 8-bit)."""
    itemsize = jnp.dtype(dtype).itemsize
    sub = {4: 8, 2: 16, 1: 32}.get(itemsize, 8)
    dims = list(shape)
    if len(dims) >= 1:
        dims[-1] = -(-dims[-1] // 128) * 128
    if len(dims) >= 2:
        dims[-2] = -(-dims[-2] // sub) * sub
    n = 1
    for d in dims:
        n *= int(d)
    return n * itemsize


# --------------------------------------------------------------------------
# Wrapper
# --------------------------------------------------------------------------

def laplace_filter(snow, clean):
    """snow, clean: (N, C, H, W) -> (snow_lap, clean_lap, mask_lap), each
    (N, 1, H, W) in the input dtype."""
    assert snow.shape == clean.shape and snow.dtype == clean.dtype
    N, C, H, W = snow.shape
    dtype = snow.dtype
    itemsize = jnp.dtype(dtype).itemsize
    HW = H * W

    # Lane-dense path for narrow images (e.g. 16x16): flatten (H, W) into the
    # 128-lane axis so loads/stores are full vregs instead of W/128-masked.
    # TODO(synk): extend to non-power-of-two narrow W via an iota % W mask.
    use_flat = (W <= 32) and ((W & (W - 1)) == 0)

    vmem_cap = _vmem_capacity_bytes()
    budget = int(0.80 * vmem_cap)        # headroom for compiler/internal scratch
    dual_tc = vmem_cap <= (65 << 20)     # v7x heuristic: 64 MiB/TC, 2 TCs/chip

    if use_flat:
        in_blk = lambda bt: _padded_bytes((bt, C, HW), dtype)
        out_blk = lambda bt: _padded_bytes((bt, 1, HW), dtype)
        plane = lambda bt: _padded_bytes((bt, 1, HW), jnp.float32)
    else:
        in_blk = lambda bt: _padded_bytes((bt, C, H, W), dtype)
        out_blk = lambda bt: _padded_bytes((bt, 1, H, W), dtype)
        plane = lambda bt: _padded_bytes((bt, 1, H, W), jnp.float32)

    def footprint(bt):
        # 2 inputs + 3 outputs, each double-buffered by the pipeline, plus
        # ~12 mean-plane-sized f32 temporaries live inside the body (mean
        # planes, shifted-slice operands, lap/relu results, boundary masks).
        return 2 * 2 * in_blk(bt) + 3 * 2 * out_blk(bt) + 12 * plane(bt)

    divisors = [d for d in range(1, N + 1) if N % d == 0]
    feasible = [d for d in divisors if footprint(d) <= budget]
    if not feasible:
        # TODO(synk): add channel / spatial tiling (accumulate the channel sum
        # into VMEM scratch) for single images whose block exceeds the budget.
        feasible = [1]
    if dual_tc and N >= 2:
        # Keep >= 2 grid steps so both TensorCores get work; prefer an even
        # step count for balanced 1:1 load.
        half = [d for d in feasible if d <= N // 2] or feasible
        even = [d for d in half if (N // d) % 2 == 0]
        bt = max(even) if even else max(half)
    else:
        bt = max(feasible)
    # TODO(synk): for N == 1 on dual-TC parts, add a second "parallel" grid
    # axis over H (halo rows recomputed) so both TensorCores get work.

    grid = (N // bt,)
    need = footprint(bt)
    vmem_limit = int(min(int(0.90 * vmem_cap),
                         max(budget, int(1.25 * need), 32 << 20)))

    if use_flat:
        snow_in = snow.reshape(N, C, HW)      # row-major -> free bitcast
        clean_in = clean.reshape(N, C, HW)
        in_spec = pl.BlockSpec((bt, C, HW), lambda b: (b, 0, 0))
        out_spec = pl.BlockSpec((bt, 1, HW), lambda b: (b, 0, 0))
        out_sd = jax.ShapeDtypeStruct((N, 1, HW), dtype)
        kernel = _make_kernel_flat(1.0 / float(C), H, W)
    else:
        snow_in, clean_in = snow, clean
        in_spec = pl.BlockSpec((bt, C, H, W), lambda b: (b, 0, 0, 0))
        out_spec = pl.BlockSpec((bt, 1, H, W), lambda b: (b, 0, 0, 0))
        out_sd = jax.ShapeDtypeStruct((N, 1, H, W), dtype)
        kernel = _make_kernel_4d(1.0 / float(C))

    cost = pl.CostEstimate(
        flops=int(2 * N * H * W * (C + 10)),
        transcendentals=0,
        bytes_accessed=int((2 * C + 3) * N * H * W * itemsize),
    )

    outs = pl.pallas_call(
        kernel,
        out_shape=(out_sd, out_sd, out_sd),
        grid_spec=pltpu.PrefetchScalarGridSpec(
            num_scalar_prefetch=0,
            grid=grid,
            in_specs=[in_spec, in_spec],
            out_specs=[out_spec, out_spec, out_spec],
        ),
        compiler_params=pltpu.CompilerParams(
            dimension_semantics=("parallel",),
            vmem_limit_bytes=vmem_limit,
        ),
        cost_estimate=cost,
    )(snow_in, clean_in)

    if use_flat:
        outs = tuple(o.reshape(N, 1, H, W) for o in outs)
    return outs


# --------------------------------------------------------------------------
# Pure-JAX reference + checks
# --------------------------------------------------------------------------

def _reference(snow, clean):
    """Pure-JAX reference (matches the PyTorch forward)."""
    k = jnp.array([[0., -1., 0.], [-1., 4., -1.], [0., -1., 0.]], jnp.float32)
    k = k.reshape(1, 1, 3, 3)

    def conv(x):
        return lax.conv_general_dilated(
            x, k, window_strides=(1, 1), padding=((1, 1), (1, 1)),
            dimension_numbers=("NCHW", "OIHW", "NCHW"))

    snow_m = jnp.mean(snow, axis=1, keepdims=True)
    clean_m = jnp.mean(clean, axis=1, keepdims=True)
    snow_lap = jnp.maximum(conv(snow_m), 0.0)
    clean_lap = jnp.maximum(conv(clean_m), 0.0)
    mask_lap = jnp.maximum(snow_lap - clean_lap, 0.0)
    return snow_lap, clean_lap, mask_lap


def _check(shape, key):
    k1, k2 = jax.random.split(key)
    snow = jax.random.uniform(k1, shape, dtype=jnp.float32)
    clean = jax.random.uniform(k2, shape, dtype=jnp.float32)
    outs = jax.block_until_ready(laplace_filter(snow, clean))
    refs = _reference(snow, clean)
    for o, r in zip(outs, refs):
        assert o.shape == r.shape and o.dtype == r.dtype
        assert jnp.allclose(o, r, atol=1e-5, rtol=1e-5), "mismatch vs reference"


if __name__ == "__main__":
    key = jax.random.PRNGKey(0)
    k_a, k_b, k_c = jax.random.split(key, 3)

    # Primary small case from the spec: W=16 -> lane-dense flattened path.
    _check((2, 4, 16, 16), k_a)
    # Flat path with non-power-of-two channel count and batch tile > 1.
    _check((8, 3, 16, 16), k_b)
    # 128-aligned W -> plain NCHW path (already lane dense).
    _check((2, 3, 8, 128), k_c)

    print("KERNEL_OK")
</pallas_src>

<mosaic_0001>
module attributes {stable_mosaic.version = 11 : i64} {
  func.func @kernel(%arg0: i32, %arg1: memref<1x4x256xf32, #tpu.memory_space<vmem>>, %arg2: memref<1x4x256xf32, #tpu.memory_space<vmem>>, %arg3: memref<1x1x256xf32, #tpu.memory_space<vmem>>, %arg4: memref<1x1x256xf32, #tpu.memory_space<vmem>>, %arg5: memref<1x1x256xf32, #tpu.memory_space<vmem>>) attributes {dimension_semantics = [#tpu.dimension_semantics<parallel>], iteration_bounds = array<i64: 2>, scalar_prefetch = 0 : i64, scratch_operands = 0 : i64, tpu.core_type = #tpu.core_type<tc>, window_params = [{transform_indices = @transform_0, window_bounds = array<i64: 1, 4, 256>}, {transform_indices = @transform_1, window_bounds = array<i64: 1, 4, 256>}, {transform_indices = @transform_2, window_bounds = array<i64: 1, 1, 256>}, {transform_indices = @transform_3, window_bounds = array<i64: 1, 1, 256>}, {transform_indices = @transform_4, window_bounds = array<i64: 1, 1, 256>}]} {
    %c0 = arith.constant 0 : index
    %c0_0 = arith.constant 0 : index
    %c0_1 = arith.constant 0 : index
    %0 = vector.load %arg1[%c0, %c0_0, %c0_1] : memref<1x4x256xf32, #tpu.memory_space<vmem>>, vector<1x4x256xf32>
    %cst = arith.constant dense<0.000000e+00> : vector<1x256xf32>
    %1 = vector.multi_reduction <add>, %0, %cst [1] : vector<1x4x256xf32> to vector<1x256xf32>
    %2 = vector.shape_cast %1 : vector<1x256xf32> to vector<1x1x256xf32>
    %cst_2 = arith.constant 2.500000e-01 : f32
    %3 = vector.broadcast %cst_2 : f32 to vector<1x1x256xf32>
    %4 = arith.mulf %2, %3 : vector<1x1x256xf32>
    %c0_3 = arith.constant 0 : index
    %c0_4 = arith.constant 0 : index
    %c0_5 = arith.constant 0 : index
    %5 = vector.load %arg2[%c0_3, %c0_4, %c0_5] : memref<1x4x256xf32, #tpu.memory_space<vmem>>, vector<1x4x256xf32>
    %cst_6 = arith.constant dense<0.000000e+00> : vector<1x256xf32>
    %6 = vector.multi_reduction <add>, %5, %cst_6 [1] : vector<1x4x256xf32> to vector<1x256xf32>
    %7 = vector.shape_cast %6 : vector<1x256xf32> to vector<1x1x256xf32>
    %cst_7 = arith.constant 2.500000e-01 : f32
    %8 = vector.broadcast %cst_7 : f32 to vector<1x1x256xf32>
    %9 = arith.mulf %7, %8 : vector<1x1x256xf32>
    %10 = tpu.iota {dimensions = array<i32: 2>} : vector<1x1x256xi32>
    %c15_i32 = arith.constant 15 : i32
    %11 = vector.broadcast %c15_i32 : i32 to vector<1x1x256xi32>
    %12 = arith.andi %10, %11 : vector<1x1x256xi32>
    %c0_i32 = arith.constant 0 : i32
    %13 = vector.broadcast %c0_i32 : i32 to vector<1x1x256xi32>
    %14 = arith.cmpi ne, %12, %13 : vector<1x1x256xi32>
    %c15_i32_8 = arith.constant 15 : i32
    %15 = vector.broadcast %c15_i32_8 : i32 to vector<1x1x256xi32>
    %16 = arith.cmpi ne, %12, %15 : vector<1x1x256xi32>
    %cst_9 = arith.constant 4.000000e+00 : f32
    %17 = vector.broadcast %cst_9 : f32 to vector<1x1x256xf32>
    %18 = arith.mulf %17, %4 : vector<1x1x256xf32>
    %cst_10 = arith.constant 0.000000e+00 : f32
    %19 = vector.broadcast %cst_10 : f32 to vector<1x1x16xf32>
    %20 = vector.extract_strided_slice %4 {offsets = [0, 0, 0], sizes = [1, 1, 240], strides = [1, 1, 1]} : vector<1x1x256xf32> to vector<1x1x240xf32>
    %21 = tpu.concatenate %19, %20 in 2 : vector<1x1x16xf32>, vector<1x1x240xf32> -> vector<1x1x256xf32>
    %22 = arith.subf %18, %21 : vector<1x1x256xf32>
    %23 = vector.extract_strided_slice %4 {offsets = [0, 0, 16], sizes = [1, 1, 240], strides = [1, 1, 1]} : vector<1x1x256xf32> to vector<1x1x240xf32>
    %24 = tpu.concatenate %23, %19 in 2 : vector<1x1x240xf32>, vector<1x1x16xf32> -> vector<1x1x256xf32>
    %25 = arith.subf %22, %24 : vector<1x1x256xf32>
    %cst_11 = arith.constant 0.000000e+00 : f32
    %26 = vector.broadcast %cst_11 : f32 to vector<1x1x1xf32>
    %27 = vector.extract_strided_slice %4 {offsets = [0, 0, 0], sizes = [1, 1, 255], strides = [1, 1, 1]} : vector<1x1x256xf32> to vector<1x1x255xf32>
    %28 = tpu.concatenate %26, %27 in 2 : vector<1x1x1xf32>, vector<1x1x255xf32> -> vector<1x1x256xf32>
    %cst_12 = arith.constant 0.000000e+00 : f32
    %29 = vector.broadcast %cst_12 : f32 to vector<1x1x256xf32>
    %30 = arith.select %14, %28, %29 : vector<1x1x256xi1>, vector<1x1x256xf32>
    %31 = arith.subf %25, %30 : vector<1x1x256xf32>
    %32 = vector.extract_strided_slice %4 {offsets = [0, 0, 1], sizes = [1, 1, 255], strides = [1, 1, 1]} : vector<1x1x256xf32> to vector<1x1x255xf32>
    %33 = tpu.concatenate %32, %26 in 2 : vector<1x1x255xf32>, vector<1x1x1xf32> -> vector<1x1x256xf32>
    %cst_13 = arith.constant 0.000000e+00 : f32
    %34 = vector.broadcast %cst_13 : f32 to vector<1x1x256xf32>
    %35 = arith.select %16, %33, %34 : vector<1x1x256xi1>, vector<1x1x256xf32>
    %36 = arith.subf %31, %35 : vector<1x1x256xf32>
    %cst_14 = arith.constant 0.000000e+00 : f32
    %37 = vector.broadcast %cst_14 : f32 to vector<1x1x256xf32>
    %38 = arith.maximumf %36, %37 : vector<1x1x256xf32>
    %cst_15 = arith.constant 4.000000e+00 : f32
    %39 = vector.broadcast %cst_15 : f32 to vector<1x1x256xf32>
    %40 = arith.mulf %39, %9 : vector<1x1x256xf32>
    %cst_16 = arith.constant 0.000000e+00 : f32
    %41 = vector.broadcast %cst_16 : f32 to vector<1x1x16xf32>
    %42 = vector.extract_strided_slice %9 {offsets = [0, 0, 0], sizes = [1, 1, 240], strides = [1, 1, 1]} : vector<1x1x256xf32> to vector<1x1x240xf32>
    %43 = tpu.concatenate %41, %42 in 2 : vector<1x1x16xf32>, vector<1x1x240xf32> -> vector<1x1x256xf32>
    %44 = arith.subf %40, %43 : vector<1x1x256xf32>
    %45 = vector.extract_strided_slice %9 {offsets = [0, 0, 16], sizes = [1, 1, 240], strides = [1, 1, 1]} : vector<1x1x256xf32> to vector<1x1x240xf32>
    %46 = tpu.concatenate %45, %41 in 2 : vector<1x1x240xf32>, vector<1x1x16xf32> -> vector<1x1x256xf32>
    %47 = arith.subf %44, %46 : vector<1x1x256xf32>
    %cst_17 = arith.constant 0.000000e+00 : f32
    %48 = vector.broadcast %cst_17 : f32 to vector<1x1x1xf32>
    %49 = vector.extract_strided_slice %9 {offsets = [0, 0, 0], sizes = [1, 1, 255], strides = [1, 1, 1]} : vector<1x1x256xf32> to vector<1x1x255xf32>
    %50 = tpu.concatenate %48, %49 in 2 : vector<1x1x1xf32>, vector<1x1x255xf32> -> vector<1x1x256xf32>
    %cst_18 = arith.constant 0.000000e+00 : f32
    %51 = vector.broadcast %cst_18 : f32 to vector<1x1x256xf32>
    %52 = arith.select %14, %50, %51 : vector<1x1x256xi1>, vector<1x1x256xf32>
    %53 = arith.subf %47, %52 : vector<1x1x256xf32>
    %54 = vector.extract_strided_slice %9 {offsets = [0, 0, 1], sizes = [1, 1, 255], strides = [1, 1, 1]} : vector<1x1x256xf32> to vector<1x1x255xf32>
    %55 = tpu.concatenate %54, %48 in 2 : vector<1x1x255xf32>, vector<1x1x1xf32> -> vector<1x1x256xf32>
    %cst_19 = arith.constant 0.000000e+00 : f32
    %56 = vector.broadcast %cst_19 : f32 to vector<1x1x256xf32>
    %57 = arith.select %16, %55, %56 : vector<1x1x256xi1>, vector<1x1x256xf32>
    %58 = arith.subf %53, %57 : vector<1x1x256xf32>
    %cst_20 = arith.constant 0.000000e+00 : f32
    %59 = vector.broadcast %cst_20 : f32 to vector<1x1x256xf32>
    %60 = arith.maximumf %58, %59 : vector<1x1x256xf32>
    %61 = arith.subf %38, %60 : vector<1x1x256xf32>
    %cst_21 = arith.constant 0.000000e+00 : f32
    %62 = vector.broadcast %cst_21 : f32 to vector<1x1x256xf32>
    %63 = arith.maximumf %61, %62 : vector<1x1x256xf32>
    %c0_22 = arith.constant 0 : index
    %c0_23 = arith.constant 0 : index
    %c0_24 = arith.constant 0 : index
    %64 = vector.load %arg3[%c0_22, %c0_23, %c0_24] : memref<1x1x256xf32, #tpu.memory_space<vmem>>, vector<1x1x256xf32>
    tpu.vector_store %arg3[%c0_22, %c0_23, %c0_24], %38 {strides = array<i32>} : memref<1x1x256xf32, #tpu.memory_space<vmem>>, vector<1x1x256xf32>,
    %c0_25 = arith.constant 0 : index
    %c0_26 = arith.constant 0 : index
    %c0_27 = arith.constant 0 : index
    %65 = vector.load %arg4[%c0_25, %c0_26, %c0_27] : memref<1x1x256xf32, #tpu.memory_space<vmem>>, vector<1x1x256xf32>
    tpu.vector_store %arg4[%c0_25, %c0_26, %c0_27], %60 {strides = array<i32>} : memref<1x1x256xf32, #tpu.memory_space<vmem>>, vector<1x1x256xf32>,
    %c0_28 = arith.constant 0 : index
    %c0_29 = arith.constant 0 : index
    %c0_30 = arith.constant 0 : index
    %66 = vector.load %arg5[%c0_28, %c0_29, %c0_30] : memref<1x1x256xf32, #tpu.memory_space<vmem>>, vector<1x1x256xf32>
    tpu.vector_store %arg5[%c0_28, %c0_29, %c0_30], %63 {strides = array<i32>} : memref<1x1x256xf32, #tpu.memory_space<vmem>>, vector<1x1x256xf32>,
    return
  }
  func.func @transform_0(%arg0: i32) -> (i32, i32, i32) {
    %c0_i32 = arith.constant 0 : i32
    %c0_i32_0 = arith.constant 0 : i32
    %c0_i32_1 = arith.constant 0 : i32
    return %arg0, %c0_i32, %c0_i32_0 : i32, i32, i32
  }
  func.func @transform_1(%arg0: i32) -> (i32, i32, i32) {
    %c0_i32 = arith.constant 0 : i32
    %c0_i32_0 = arith.constant 0 : i32
    %c0_i32_1 = arith.constant 0 : i32
    return %arg0, %c0_i32, %c0_i32_0 : i32, i32, i32
  }
  func.func @transform_2(%arg0: i32) -> (i32, i32, i32) {
    %c0_i32 = arith.constant 0 : i32
    %c0_i32_0 = arith.constant 0 : i32
    %c0_i32_1 = arith.constant 0 : i32
    return %arg0, %c0_i32, %c0_i32_0 : i32, i32, i32
  }
  func.func @transform_3(%arg0: i32) -> (i32, i32, i32) {
    %c0_i32 = arith.constant 0 : i32
    %c0_i32_0 = arith.constant 0 : i32
    %c0_i32_1 = arith.constant 0 : i32
    return %arg0, %c0_i32, %c0_i32_0 : i32, i32, i32
  }
  func.func @transform_4(%arg0: i32) -> (i32, i32, i32) {
    %c0_i32 = arith.constant 0 : i32
    %c0_i32_0 = arith.constant 0 : i32
    %c0_i32_1 = arith.constant 0 : i32
    return %arg0, %c0_i32, %c0_i32_0 : i32, i32, i32
  }
}

</mosaic_0001>

<bundles_post_ra>
// kernel: tpu_custom_call.1
= control target key start
LH: loop header
LB: loop body
LE: loop exit
PB: predicated region body
PF: predicated region fallthrough
CT: control target
= control target key end

     0   :  { %10 = vsyncpa [#allocation3], 0  ;;  %s1383_s0 = inlined_call_operand.hbm [shape: f32[2,4,256], index: 0, kind: input, shape index: {}]   ;;  %s1384_s1 = inlined_call_operand.hbm [shape: f32[2,4,256], index: 1, kind: input, shape index: {}]   ;;  %s1385_s2 = inlined_call_operand.hbm [shape: f32[2,1,256], index: 2, kind: output, shape index: {0}]   ;;  %s1386_s3 = inlined_call_operand.hbm [shape: f32[2,1,256], index: 3, kind: output, shape index: {1}]   ;;  %s1387_s4 = inlined_call_operand.hbm [shape: f32[2,1,256], index: 4, kind: output, shape index: {2}]  }
   0x1   :  { %12 = vsyncpa [#allocation3 + $0x1], 0 }
   0x2   :  { %13 = vsyncpa [#allocation6], 0 }
   0x3   :  { %15 = vsyncpa [#allocation6 + $0x1], 0 }
   0x4   :  { %16 = vsyncpa [#allocation4], 0 }
   0x5   :  { %18 = vsyncpa [#allocation4 + $0x1], 0 }
   0x6   :  { %19 = vsyncpa [#allocation9], 0 }
   0x7   :  { %21 = vsyncpa [#allocation9 + $0x1], 0  ;;  %s1022_s15 = smov 0   ;;  %s1024_s16 = smov 0  }
   0x8   :  { %s1026_s17 = smov 0   ;;  %s1028_s18 = smov 0  }
   0x9 LB: > { %s1043_s19 = sadd.s32 4294967295, %s985_s18   ;;  %s1390_s20 = sadd.s32 4294967294, %s985_s18   ;;  %s985_s18 = sphi %s1028_s18, %s1418_s18   ;;  %s981_s17 = sphi %s1026_s17, %s1417_s17   ;;  %s977_s16 = sphi %s1024_s16, %s1416_s16   ;;  %s973_s15 = sphi %s1022_s15, %s1415_s15  }
   0xa   : > { %s1047_s21 = sadd.s32 1, %s985_s18   ;;  %s34_s22 = sadd.s32 1, %s981_s17 }
   0xb   : > { %s31_s23 = ssub.s32 %s985_s18, %s1047_s21  ;;  %p41_p0 = scmp.ne.s32.totalorder %s981_s17, %s977_s16 }
   0xc   : > { %p32_p1 = scmp.eq.s32.totalorder %s31_s23, 0  ;;  %p42_p2 = scmp.eq.s32.totalorder %s985_s18, 0 }
   0xd   : > { %p47_p3 = scmp.ne.s32.totalorder %s977_s16, %s973_s15  ;;  %p48_p4 = scmp.eq.s32.totalorder %s1043_s19, 0 }
   0xe   : > { %s1059_s24 = scalar_select %p32_p1, %s981_s17, %s34_s22  }
   0xf   : > { %p1061_p5 = por %p42_p2, %p41_p0  ;;  %p1065_p6 = por %p48_p4, %p47_p3 }
  0x10   : > { %p97_p7 = scmp.eq.s32.totalorder %s1043_s19, 1  ;;  %p103_p8 = scmp.eq.s32.totalorder %s1390_s20, 1 }
  0x11   : > { %s1392_s26 = scalar_select %p1065_p6, 1, 0 }
  0x12   : > { %p754_p10 = scmp.lt.s32.totalorder %s985_s18, 2  ;;  %p1074_p11 = por %p97_p7, %p41_p0 }
  0x13   : > { %p1078_p12 = por %p103_p8, %p47_p3  ;;  %s1083_s29 = sand.u32 1, %s981_s17  }
  0x14   : > { %s1393_s27 = scalar_select %p1074_p11, 1, 0 }
  0x15   : > { %s1394_s28 = scalar_select %p1078_p12, 1, 0 }
  0x16   : > { %s722_s30 = sshll.u32 %s985_s18, 7  ;;  %s699_s5 = sshll.u32 %s1083_s29, 3 }
  0x17   : > { %s1092_s8 = scalar_lea.hbm %s1383_s0, %s722_s30  ;;  %s179_s9 = scalar_lea.vmem [#allocation2], %s699_s5 }
  0x18   : > { %s187_s10 = sshll.u32 %s179_s9, 4  ;;  %p1098_p13 = pnand %p754_p10, %p1061_p5  ;;  %s1102_s10 = int_to_ptr.vmem [resolvable:$true] %s187_s10 }
  0x19   : > { %s176_s12 = scalar_lea.sflag [#allocation3], %s1083_s29  ;;  %s795_s13 = scalar_lea.hbm %s1092_s8, 128 }
  0x1a   : > { %p796_p2 = scmp.ne.s32.totalorder %s1092_s8, %s795_s13  ;;  %p797_p3 = pneg %p1098_p13 }
  0x1b   : > { %s800_s23 = scalar_lea.hbm %s1383_s0, 256  ;;  %p801_p5 = scmp.lt.u32.totalorder %s1092_s8, %s1383_s0 }
  0x1c   : > { %p798_p4 = pnand %p797_p3, %p796_p2  ;;  %p802_p8 = scmp.lt.u32.totalorder %s800_s23, %s795_s13 }
  0x1d   : > { %p804_p9 = scmp.lt.u32.totalorder %s795_s13, %s1092_s8 }
  0x1e   : > { %p799_p7 = pneg %p798_p4  ;;  %p803_p10 = por %p802_p8, %p801_p5 }
  0x20   : > { %p805_p0 = por %p804_p9, %p803_p10 }
  0x22   : > { %p806_p1 = pnand %p805_p0, %p799_p7 }
  0x24   : > { %809 = shalt.err (!%p806_p1)
}
  0x25   : > { %s810_s7 = scalar_lea.vmem %s1102_s10, 128  ;;  %s987_s9 = smov [#allocation2]  }
  0x26   : > { %p811_p2 = scmp.ne.s32.totalorder %s1102_s10, %s810_s7  ;;  %s815_s14 = sshll.u32 %s987_s9, 4  ;;  %s816_s14 = int_to_ptr.vmem [resolvable:$false] %s815_s14 }
  0x27   : > { %s817_s22 = scalar_lea.vmem %s816_s14, 256  ;;  %p818_p11 = scmp.lt.s32.totalorder %s1102_s10, %s816_s14 }
  0x28   : > { %p813_p4 = pnand %p811_p2, %p797_p3  ;;  %p819_p5 = scmp.lt.s32.totalorder %s817_s22, %s810_s7 }
  0x2a   : > { %p814_p12 = pneg %p813_p4  ;;  %p820_p8 = por %p819_p5, %p818_p11 }
  0x2c   : > { %p821_p9 = pnand %p820_p8, %p814_p12 }
  0x2e   : > { %824 = shalt.err (!%p821_p9)
}
  0x2f   : > { %740 = dma.hbm_to_vmem [thread:$0]  (!%p1098_p13), %s1092_s8, 128, %s1102_s10, %s176_s12  }
  0x30   : > { %p1396_p0 = scmp.lt.s32.totalorder %s985_s18, 3  ;;  %p1397_p1 = scmp.ge.s32.totalorder %s985_s18, 1 }
  0x31   : > { %s1145_s6 = scalar_lea.hbm %s1384_s1, %s722_s30  ;;  %s198_s7 = scalar_lea.vmem [#allocation5], %s699_s5 }
  0x32   : > { %p1136_p7 = pnand %p1397_p1, %p1396_p0  ;;  %s206_s9 = sshll.u32 %s198_s7, 4  ;;  %s207_s9 = int_to_ptr.vmem [resolvable:$true] %s206_s9 }
  0x33   : > { %s195_s8 = scalar_lea.sflag [#allocation6], %s1083_s29  ;;  %s825_s10 = scalar_lea.hbm %s1145_s6, 128 }
  0x34   : > { %s1398_s13 = scalar_select %p1136_p7, 1, 0 }
  0x35   : > { %p826_p11 = scmp.ne.s32.totalorder %s1145_s6, %s825_s10  ;;  %s830_s30 = scalar_lea.hbm %s1384_s1, 256 }
  0x36   : > { %p831_p2 = scmp.lt.u32.totalorder %s1145_s6, %s1384_s1  ;;  %p832_p4 = scmp.lt.u32.totalorder %s830_s30, %s825_s10 }
  0x37   : > { %p828_p12 = pnand %p826_p11, %p797_p3  ;;  %p834_p8 = scmp.lt.u32.totalorder %s825_s10, %s1145_s6 }
  0x38   : > { %p833_p5 = por %p832_p4, %p831_p2 }
  0x39   : > { %p829_p10 = pneg %p828_p12 }
  0x3a   : > { %p835_p9 = por %p834_p8, %p833_p5 }
  0x3c   : > { %p836_p0 = pnand %p835_p9, %p829_p10 }
  0x3e   : > { %839 = shalt.err (!%p836_p0)
}
  0x3f   : > { %s840_s29 = scalar_lea.vmem %s207_s9, 128  ;;  %s988_s5 = smov [#allocation5]  }
  0x40   : > { %p841_p1 = scmp.ne.s32.totalorder %s207_s9, %s840_s29  ;;  %s845_s25 = sshll.u32 %s988_s5, 4  ;;  %s846_s25 = int_to_ptr.vmem [resolvable:$false] %s845_s25 }
  0x41   : > { %s847_s7 = scalar_lea.vmem %s846_s25, 256  ;;  %p848_p6 = scmp.lt.s32.totalorder %s207_s9, %s846_s25 }
  0x42   : > { %p843_p11 = pnand %p841_p1, %p797_p3  ;;  %p849_p7 = scmp.lt.s32.totalorder %s847_s7, %s840_s29 }
  0x44   : > { %p844_p12 = pneg %p843_p11  ;;  %p850_p2 = por %p849_p7, %p848_p6 }
  0x46   : > { %p851_p4 = pnand %p850_p2, %p844_p12 }
  0x48   : > { %854 = shalt.err (!%p851_p4)
}
  0x49   : > { %743 = dma.hbm_to_vmem [thread:$0]  (!%p1098_p13), %s1145_s6, 128, %s207_s9, %s195_s8  }
  0x4a   : > { %p1399_p10 = scmp.ne.s32.totalorder %s1398_s13, 0 }
  0x4b   : > { %s1172_s10 = sand.u32 (!%p1399_p10), 1, %s977_s16   ;;  %p1400_p3 = scmp.ne.s32.totalorder (!%p1399_p10), %s1392_s26, 0 }
  0x4c   : > { %215 = sbr.rel (%p1399_p10) target bundleno = 316 (0x13c), region = 28  ;;  %s706_s12 = sshll.u32 (!%p1399_p10), %s1172_s10, 3 }
  0x4d   : > { %s218_s14 = scalar_lea.sflag (!%p1399_p10), [#allocation3], %s1172_s10  ;;  %s221_s30 = scalar_lea.vmem (!%p1399_p10), [#allocation2], %s706_s12 }
  0x53   : > { %956 = dma.done.wait (%p1400_p3), %s218_s14, 128  }
  0x54   : > { %958 = vsyncadd (%p1400_p3), %s218_s14, 4294967168  ;;  %s227_s11 = scalar_lea.sflag [#allocation6], %s1172_s10  ;;  %s230_s6 = scalar_lea.vmem [#allocation5], %s706_s12 }
  0x55   : > { %960 = dma.done.wait (%p1400_p3), %s227_s11, 128  }
  0x56   : > { %962 = vsyncadd (%p1400_p3), %s227_s11, 4294967168  ;;  %vm274_vm0 = vcmask 1043456   ;;  %v291_v0 = vld [vmem:[%s230_s6] sm:$0xff]  ;;  %v270_v1 = vld [vmem:[%s221_s30] sm:$0xff]  ;;  %s989_s26 = smov 16   ;;  %s990_s13 = smov 112   ;;  %v311_v40 = vlaneseq }
  0x57   : > { %v295_v2 = vsel %vm274_vm0, %v291_v0, 0.0  ;;  %v275_v3 = vsel %vm274_vm0, %v270_v1, 0.0  ;;  %v293_v4 = vcombine.high %v291_v0, %v291_v0  ;;  %v272_v5 = vcombine.high %v270_v1, %v270_v1  ;;  %s991_s9 = smov 1   ;;  %s992_s8 = smov 127  }
  0x58   : > { %v296_v6 = vrot.slane %v295_v2, 4  ;;  %v276_v7 = vrot.slane %v275_v3, 4  ;;  %v312_v43 = vand.u32 127, %v311_v40  ;;  %vm328_vm1 = vcmask 130048   ;;  %s1232_s22 = sshll.u32 %s1172_s10, 1  ;;  %s1241_s23 = sshll.u32 %s1043_s19, 5 }
  0x59   : > { %v302_v8 = vsel %vm274_vm0, %v293_v4, 0.0  ;;  %v282_v9 = vsel %vm274_vm0, %v272_v5, 0.0  ;;  %vm350_vm2 = vcmask 7168   ;;  %v993_v48 = vmov 1966171168   ;;  %s255_s29 = scalar_lea.vmem [#allocation7], %s1232_s22  ;;  %s1259_s11 = scalar_lea.hbm %s1385_s2, %s1241_s23 }
  0x5a   : > { %v297_v10 = vadd.f32 %v296_v6, %v295_v2  ;;  %v277_v11 = vadd.f32 %v276_v7, %v275_v3  ;;  %v303_v12 = vrot.slane %v302_v8, 4  ;;  %v283_v13 = vrot.slane %v282_v9, 4  ;;  %s514_s5 = sshll.u32 %s255_s29, 4  ;;  %s494_s25 = sand.u32 1, %s1043_s19   ;;  %s1261_s5 = int_to_ptr.vmem [resolvable:$true] %s514_s5 }
  0x5b   : > { %v313_v44 = vadd.s32 128, %v312_v43  ;;  %v314_v47 = vand.u32 15, %v312_v43  ;;  %v432_v49 = vunpack.c.l.s4 %v993_v48  ;;  %vm339_vm3 = vcmask 916480   ;;  %s262_s7 = scalar_lea.vmem [#allocation8], %s1232_s22  ;;  %p1411_p13 = scmp.ne.s32.totalorder %s1393_s27, 0 }
  0x5c   : > { %v298_v14 = vrot.slane %v297_v10, 2  ;;  %v278_v15 = vrot.slane %v277_v11, 2  ;;  %v304_v16 = vadd.f32 %v303_v12, %v302_v8  ;;  %v284_v17 = vadd.f32 %v283_v13, %v282_v9  ;;  %s528_s12 = sshll.u32 %s262_s7, 4  ;;  %s994_s14 = smov [#allocation7]   ;;  %s1270_s12 = int_to_ptr.vmem [resolvable:$true] %s528_s12 }
  0x5d   : > { %v315_v50 = vand.u32 15, %v313_v44  ;;  %v435_v56 = vshrl.u32 %v311_v40, 7  ;;  %vm1189_vm4 = vcmp.ne.s32.totalorder %v314_v47, 0  ;;  %v433_v63 = vunpack.c.0.s8 %v432_v49  ;;  %s859_s30 = sshll.u32 %s994_s14, 4  ;;  %s860_s30 = int_to_ptr.vmem [resolvable:$false] %s859_s30 }
  0x5e   : > { %v299_v18 = vadd.f32 %v298_v14, %v297_v10  ;;  %v279_v19 = vadd.f32 %v278_v15, %v277_v11  ;;  %v305_v20 = vrot.slane %v304_v16, 2  ;;  %v285_v21 = vrot.slane %v284_v17, 2  ;;  %s861_s6 = scalar_lea.vmem %s860_s30, 64  ;;  %p862_p8 = scmp.lt.s32.totalorder %s1261_s5, %s860_s30 }
  0x5f   : > { %vm1195_vm5 = vcmp.ne.s32.totalorder %v315_v50, 0  ;;  %vm363_vm6 = vcmask 1039360   ;;  %vm1200_vm7 = vcmp.ne.s32.totalorder %v314_v47, 15  ;;  %vm1212_vm8 = vcmp.ne.s32.totalorder %v315_v50, 15 }
  0x60   : > { %v300_v22 = vrot.slane %v299_v18, 1  ;;  %v280_v23 = vrot.slane %v279_v19, 1  ;;  %v306_v24 = vadd.f32 %v305_v20, %v304_v16  ;;  %v286_v25 = vadd.f32 %v285_v21, %v284_v17 }
  0x61   : > { %v1234_v43 = vsub.s32 %v433_v63, %v435_v56  ;;  %vm1247_vm9 = vcmp.lt.s32.totalorder %v311_v40, 256 }
  0x62   : > { %v301_v26 = vadd.f32 %v300_v22, %v299_v18  ;;  %v281_v27 = vadd.f32 %v280_v23, %v279_v19  ;;  %v307_v28 = vrot.slane %v306_v24, 1  ;;  %v287_v29 = vrot.slane %v286_v25, 1 }
  0x64   : > { %v309_v30 = vmul.f32 0.25, %v301_v26  ;;  %v289_v31 = vmul.f32 0.25, %v281_v27  ;;  %v308_v32 = vadd.f32 %v307_v28, %v306_v24  ;;  %v288_v34 = vadd.f32 %v287_v29, %v286_v25 }
  0x66   : > { %378 = vrot.lane.b32.xlu1 %v309_v30, %s989_s26  ;;  %324 = vrot.lane.b32.xlu0 %v289_v31, %s989_s26  ;;  %v310_v33 = vmul.f32 0.25, %v308_v32  ;;  %v290_v35 = vmul.f32 0.25, %v288_v34  ;;  %v320_v51 = vmul.f32 4.0, %v289_v31  ;;  %v374_v54 = vmul.f32 4.0, %v309_v30 }
  0x68   : > { %v321_v60 = vmul.f32 4.0, %v290_v35  ;;  %v375_v61 = vmul.f32 4.0, %v310_v33 }
  0x6a   : > { %380 = vrot.lane.b32.xlu1 %v310_v33, %s989_s26  ;;  %335 = vrot.lane.b32.xlu0 %v289_v31, %s990_s13 }
  0x6e   : > { %388 = vrot.lane.b32.xlu0 %v309_v30, %s990_s13  ;;  %337 = vrot.lane.b32.xlu1 %v290_v35, %s990_s13 }
  0x72   : > { %346 = vrot.lane.b32.xlu0 %v289_v31, %s991_s9  ;;  %390 = vrot.lane.b32.xlu1 %v310_v33, %s990_s13  ;;  %s1268_s13 = scalar_lea.hbm %s1386_s3, %s1241_s23 }
  0x76   : > { %398 = vrot.lane.b32.xlu0 %v309_v30, %s991_s9  ;;  %348 = vrot.lane.b32.xlu1 %v290_v35, %s991_s9 }
  0x7a   : > { %400 = vrot.lane.b32.xlu1 %v310_v33, %s991_s9  ;;  %326 = vrot.lane.b32.xlu0 %v290_v35, %s989_s26  ;;  %s490_s9 = scalar_lea.sflag [#allocation4], %s1172_s10 }
  0x7e   : > { %361 = vrot.lane.b32.xlu1 %v290_v35, %s992_s8  ;;  %359 = vrot.lane.b32.xlu0 %v289_v31, %s992_s8 }
  0x82   : > { %412 = vrot.lane.b32.xlu1 %v310_v33, %s992_s8  ;;  %410 = vrot.lane.b32.xlu0 %v309_v30, %s992_s8  ;;  %s855_s8 = scalar_lea.vmem %s1261_s5, 32 }
  0x83   : > { %p856_p6 = scmp.ne.s32.totalorder %s1261_s5, %s855_s8  ;;  %p863_p9 = scmp.lt.s32.totalorder %s861_s6, %s855_s8 }
  0x85   : > { %p857_p7 = pnand %p856_p6, %p1411_p13  ;;  %p864_p0 = por %p863_p9, %p862_p8 }
  0x87   : > { %p858_p5 = pneg %p857_p7 }
  0x89   : > { %p865_p1 = pnand %p864_p0, %p858_p5 }
  0xd8   : > { %v379_v36 = vpop.permute.xlu1 %378  ;;  %v325_v37 = vpop.permute.xlu0 %324 }
  0xd9   : > { %v332_v55 = vsel %vm328_vm1, 0.0, %v325_v37  ;;  %v385_v57 = vsel %vm328_vm1, 0.0, %v379_v36 }
  0xda   : > { %v333_v1 = vsub.f32 %v320_v51, %v332_v55  ;;  %v386_v6 = vsub.f32 %v374_v54, %v385_v57 }
  0xdc   : > { %v381_v38 = vpop.permute.xlu1 %380  ;;  %v336_v39 = vpop.permute.xlu0 %335 }
  0xdd   : > { %v382_v2 = vsel %vm328_vm1, %v379_v36, %v381_v38 }
  0xde   : > { %v387_v14 = vsub.f32 %v375_v61, %v382_v2 }
  0xe0   : > { %v389_v41 = vpop.permute.xlu0 %388  ;;  %v338_v42 = vpop.permute.xlu1 %337 }
  0xe1   : > { %v340_v62 = vsel %vm339_vm3, %v336_v39, %v338_v42  ;;  %v343_v15 = vsel %vm339_vm3, %v338_v42, 0.0 }
  0xe2   : > { %v344_v10 = vsub.f32 %v333_v1, %v340_v62 }
  0xe4   : > { %v347_v45 = vpop.permute.xlu0 %346  ;;  %v391_v46 = vpop.permute.xlu1 %390 }
  0xe5   : > { %v354_v59 = vsel %vm350_vm2, 0.0, %v347_v45  ;;  %v392_v8 = vsel %vm339_vm3, %v389_v41, %v391_v46  ;;  %v395_v19 = vsel %vm339_vm3, %v391_v46, 0.0 }
  0xe6   : > { %v355_v7 = vsel %vm1189_vm4, %v354_v59, 0.0  ;;  %v396_v20 = vsub.f32 %v386_v6, %v392_v8  ;;  %v397_v32 = vsub.f32 %v387_v14, %v395_v19 }
  0xe7   : > { %v357_v18 = vsub.f32 %v344_v10, %v355_v7 }
  0xe8   : > { %v399_v52 = vpop.permute.xlu0 %398  ;;  %v349_v53 = vpop.permute.xlu1 %348 }
  0xe9   : > { %v405_v11 = vsel %vm350_vm2, 0.0, %v399_v52  ;;  %v351_v12 = vsel %vm350_vm2, %v347_v45, %v349_v53 }
  0xea   : > { %v406_v24 = vsel %vm1189_vm4, %v405_v11, 0.0  ;;  %v356_v25 = vsel %vm1195_vm5, %v351_v12, 0.0 }
  0xeb   : > { %v408_v34 = vsub.f32 %v396_v20, %v406_v24 }
  0xec   : > { %v401_v3 = vpop.permute.xlu1 %400  ;;  %v327_v4 = vpop.permute.xlu0 %326 }
  0xed   : > { %v329_v9 = vsel %vm328_vm1, %v325_v37, %v327_v4  ;;  %v402_v16 = vsel %vm350_vm2, %v399_v52, %v401_v3 }
  0xee   : > { %v334_v13 = vsub.f32 %v321_v60, %v329_v9  ;;  %v407_v28 = vsel %vm1195_vm5, %v402_v16, 0.0 }
  0xef   : > { %v409_v38 = vsub.f32 %v397_v32, %v407_v28 }
  0xf0   : > { %v345_v21 = vsub.f32 %v334_v13, %v343_v15  ;;  %v362_v22 = vpop.permute.xlu1 %361  ;;  %v360_v23 = vpop.permute.xlu0 %359 }
  0xf1   : > { %v367_v26 = vsel %vm363_vm6, %v362_v22, 0.0  ;;  %v364_v27 = vsel %vm363_vm6, %v360_v23, %v362_v22 }
  0xf2   : > { %v368_v29 = vsel %vm1200_vm7, %v364_v27, 0.0  ;;  %v369_v30 = vsel %vm1212_vm8, %v367_v26, 0.0  ;;  %v358_v31 = vsub.f32 %v345_v21, %v356_v25 }
  0xf3   : > { %v370_v33 = vsub.f32 %v357_v18, %v368_v29 }
  0xf4   : > { %v413_v35 = vpop.permute.xlu1 %412  ;;  %v371_v36 = vsub.f32 %v358_v31, %v369_v30  ;;  %v411_v37 = vpop.permute.xlu0 %410 }
  0xf5   : > { %v372_v39 = vmax.f32 %v370_v33, 0.0  ;;  %v417_v41 = vsel %vm363_vm6, %v413_v35, 0.0  ;;  %v414_v42 = vsel %vm363_vm6, %v411_v37, %v413_v35 }
  0xf6   : > { %v373_v44 = vmax.f32 %v371_v36, 0.0  ;;  %v419_v45 = vsel %vm1212_vm8, %v417_v41, 0.0  ;;  %v418_v46 = vsel %vm1200_vm7, %v414_v42, 0.0 }
  0xf7   : > { %v421_v47 = vsub.f32 %v409_v38, %v419_v45  ;;  %v420_v48 = vsub.f32 %v408_v34, %v418_v46 }
  0xf8   : > { %v430_v49 = vcombine.low %v372_v39, %v373_v44 }
  0xf9   : > { %v423_v50 = vmax.f32 %v421_v47, 0.0  ;;  %v422_v51 = vmax.f32 %v420_v48, 0.0 }
  0xfa   : > { %v437_v52 = vrot.slane %v430_v49, %v1234_v43 }
  0xfb   : > { %v425_v53 = vsub.f32 %v373_v44, %v423_v50  ;;  %v424_v54 = vsub.f32 %v372_v39, %v422_v51  ;;  %v453_v55 = vcombine.low %v422_v51, %v423_v50 }
  0xfc   : > { %v444_v57 = vrot.slane %v437_v52, %v1234_v43 }
  0xfd   : > { %v427_v58 = vmax.f32 %v425_v53, 0.0  ;;  %v426_v40 = vmax.f32 %v424_v54, 0.0  ;;  %v460_v59 = vrot.slane %v453_v55, %v1234_v43 }
  0xfe   : > { %450 = vst.msk [vmem:[%s255_s29] sm:$0x3] %vm1247_vm9, %v444_v57 }
  0xff   : > { %v467_v60 = vrot.slane %v460_v59, %v1234_v43  ;;  %v472_v61 = vcombine.low %v426_v40, %v427_v58 }
 0x100   : > { %868 = shalt.err (!%p865_p1)
}
 0x101   : > { %s869_s10 = scalar_lea.hbm %s1259_s11, 32  ;;  %s873_s14 = scalar_lea.hbm %s1385_s2, 64 }
 0x102   : > { %p870_p11 = scmp.ne.s32.totalorder %s1259_s11, %s869_s10  ;;  %p874_p4 = scmp.lt.u32.totalorder %s1259_s11, %s1385_s2 }
 0x103   : > { %p875_p10 = scmp.lt.u32.totalorder %s873_s14, %s869_s10  ;;  %p877_p6 = scmp.lt.u32.totalorder %s869_s10, %s1259_s11 }
 0x104   : > { %p871_p12 = pnand %p870_p11, %p1411_p13 }
 0x105   : > { %p876_p3 = por %p875_p10, %p874_p4 }
 0x106   : > { %p872_p2 = pneg %p871_p12 }
 0x107   : > { %p878_p7 = por %p877_p6, %p876_p3 }
 0x109   : > { %p879_p5 = pnand %p878_p7, %p872_p2 }
 0x10b   : > { %882 = shalt.err (!%p879_p5)
}
 0x10c   : > { %731 = dma.vmem_to_hbm [thread:$0]  (%p1411_p13), %s1261_s5, 32, %s1259_s11, %s490_s9   ;;  %v479_v62 = vrot.slane %v472_v61, %v1234_v43  ;;  %469 = vst.msk [vmem:[%s262_s7] sm:$0x3] %vm1247_vm9, %v467_v60 }
 0x10d   : > { %s269_s20 = scalar_lea.vmem [#allocation10], %s1232_s22  ;;  %s1309_s6 = scalar_lea.sflag [#allocation9], %s494_s25 }
 0x10e   : > { %s1300_s8 = sshll.u32 %s269_s20, 4  ;;  %s883_s10 = scalar_lea.vmem %s1270_s12, 32  ;;  %s543_s8 = int_to_ptr.vmem [resolvable:$true] %s1300_s8 }
 0x10f   : > { %p884_p8 = scmp.ne.s32.totalorder %s1270_s12, %s883_s10  ;;  %s995_s29 = smov [#allocation8]  }
 0x110   : > { %s887_s5 = sshll.u32 %s995_s29, 4  ;;  %s888_s5 = int_to_ptr.vmem [resolvable:$false] %s887_s5 }
 0x111   : > { %p885_p9 = pnand %p884_p8, %p1411_p13  ;;  %s889_s11 = scalar_lea.vmem %s888_s5, 64 }
 0x112   : > { %p890_p1 = scmp.lt.s32.totalorder %s1270_s12, %s888_s5  ;;  %p891_p11 = scmp.lt.s32.totalorder %s889_s11, %s883_s10 }
 0x113   : > { %p886_p0 = pneg %p885_p9 }
 0x114   : > { %p892_p12 = por %p891_p11, %p890_p1 }
 0x116   : > { %p893_p2 = pnand %p892_p12, %p886_p0 }
 0x118   : > { %896 = shalt.err (!%p893_p2)
}
 0x119   : > { %s897_s19 = scalar_lea.hbm %s1268_s13, 32  ;;  %s901_s9 = scalar_lea.hbm %s1386_s3, 64 }
 0x11a   : > { %p898_p4 = scmp.ne.s32.totalorder %s1268_s13, %s897_s19  ;;  %p902_p6 = scmp.lt.u32.totalorder %s1268_s13, %s1386_s3 }
 0x11b   : > { %p903_p7 = scmp.lt.u32.totalorder %s901_s9, %s897_s19  ;;  %p905_p8 = scmp.lt.u32.totalorder %s897_s19, %s1268_s13 }
 0x11c   : > { %p899_p10 = pnand %p898_p4, %p1411_p13 }
 0x11d   : > { %p904_p5 = por %p903_p7, %p902_p6 }
 0x11e   : > { %p900_p3 = pneg %p899_p10 }
 0x11f   : > { %p906_p9 = por %p905_p8, %p904_p5 }
 0x121   : > { %p907_p0 = pnand %p906_p9, %p900_p3 }
 0x123   : > { %910 = shalt.err (!%p907_p0)
}
 0x124   : > { %732 = dma.vmem_to_hbm [thread:$0]  (%p1411_p13), %s1270_s12, 32, %s1268_s13, %s1309_s6   ;;  %v486_v63 = vrot.slane %v479_v62, %v1234_v43 }
 0x125   : > { %s1338_s29 = scalar_lea.hbm %s1387_s4, %s1241_s23  ;;  %s911_s5 = scalar_lea.vmem %s543_s8, 32 }
 0x126   : > { %488 = vst.msk [vmem:[%s269_s20] sm:$0x3] %vm1247_vm9, %v486_v63  ;;  %p912_p1 = scmp.ne.s32.totalorder %s543_s8, %s911_s5  ;;  %s996_s11 = smov [#allocation10]  }
 0x127   : > { %s915_s19 = sshll.u32 %s996_s11, 4  ;;  %s916_s19 = int_to_ptr.vmem [resolvable:$false] %s915_s19 }
 0x128   : > { %p913_p11 = pnand %p912_p1, %p1411_p13  ;;  %s917_s12 = scalar_lea.vmem %s916_s19, 64 }
 0x129   : > { %p918_p2 = scmp.lt.s32.totalorder %s543_s8, %s916_s19  ;;  %p919_p4 = scmp.lt.s32.totalorder %s917_s12, %s911_s5 }
 0x12a   : > { %p914_p12 = pneg %p913_p11 }
 0x12b   : > { %p920_p10 = por %p919_p4, %p918_p2 }
 0x12d   : > { %p921_p3 = pnand %p920_p10, %p914_p12 }
 0x12f   : > { %924 = shalt.err (!%p921_p3)
}
 0x130   : > { %s925_s22 = scalar_lea.hbm %s1338_s29, 32  ;;  %s929_s20 = scalar_lea.hbm %s1387_s4, 64 }
 0x131   : > { %p926_p6 = scmp.ne.s32.totalorder %s1338_s29, %s925_s22  ;;  %p930_p8 = scmp.lt.u32.totalorder %s1338_s29, %s1387_s4 }
 0x132   : > { %p931_p9 = scmp.lt.u32.totalorder %s929_s20, %s925_s22  ;;  %p933_p1 = scmp.lt.u32.totalorder %s925_s22, %s1338_s29 }
 0x133   : > { %p927_p7 = pnand %p926_p6, %p1411_p13 }
 0x134   : > { %p932_p0 = por %p931_p9, %p930_p8 }
 0x135   : > { %p928_p5 = pneg %p927_p7 }
 0x136   : > { %p934_p11 = por %p933_p1, %p932_p0 }
 0x138   : > { %p935_p12 = pnand %p934_p11, %p928_p5 }
 0x13a   : > { %938 = shalt.err (!%p935_p12)
}
 0x13b   : > { %733 = dma.vmem_to_hbm [thread:$0]  (%p1411_p13), %s543_s8, 32, %s1338_s29, %s1309_s6  }
 0x13c PF: > { %s554_s9 = sand.u32 1, %s973_s15   ;;  %p1412_p2 = scmp.ne.s32.totalorder %s1394_s28, 0 }
 0x13d   : > { %p1413_p4 = scmp.ge.s32.totalorder %s985_s18, 2  ;;  %s555_s26 = scalar_lea.sflag [#allocation4], %s554_s9 }
 0x13f   : > { %p745_p10 = pnand %p1413_p4, %p1412_p2 }
 0x141   : > { %964 = dma.done.wait (!%p745_p10), %s555_s26, 32  }
 0x142   : > { %966 = vsyncadd (!%p745_p10), %s555_s26, 4294967264  ;;  %s1414_s14 = sadd.s32 4294967294, %s985_s18  }
 0x143   : > { %s563_s30 = sand.u32 1, %s1414_s14  }
 0x144   : > { %s564_s10 = scalar_lea.sflag [#allocation9], %s563_s30 }
 0x145   : > { %968 = dma.done.wait (!%p745_p10), %s564_s10, 64  }
 0x146   : > { %970 = vsyncadd (!%p745_p10), %s564_s10, 4294967232  ;;  %p24_p13 = scmp.ge.s32.totalorder %s1047_s21, 4   ;;  %s1415_s15 = smov %s977_s16 }
 0x147   : > { %s1416_s16 = smov %s981_s17  ;;  %s1417_s17 = smov %s1059_s24 }
 0x148   : > { %s1418_s18 = smov %s1047_s21  ;;  %26 = sbr.rel (!%p24_p13) target bundleno = 9 (0x9), region = 118 }
 0x14f   :  { %578 = vsyncpa [#allocation3], 1 }
 0x150   :  { %580 = vsyncpa [#allocation3 + $0x1], 1 }
 0x151   :  { %581 = vsyncpa [#allocation6], 1 }
 0x152   :  { %583 = vsyncpa [#allocation6 + $0x1], 1 }
 0x153   :  { %584 = vsyncpa [#allocation4], 1 }
 0x154   :  { %586 = vsyncpa [#allocation4 + $0x1], 1 }
 0x155   :  { %587 = vsyncpa [#allocation9], 1 }
 0x156   :  { %589 = vsyncpa [#allocation9 + $0x1], 1 }

</bundles_post_ra>
